<compile_context>
chip_gen: v7x
topology: tpu7x:2x2x1
jax: 0.10.0
libtpu: 0.0.40
codegen_flags: <defaults>
</compile_context>

<pallas_src>
import functools

import jax
import jax.numpy as jnp
from jax.experimental import pallas as pl
from jax.experimental.pallas import tpu as pltpu


def _cdiv(a, b):
    return -(-a // b)


def _round_up(a, b):
    return _cdiv(a, b) * b


@functools.lru_cache(maxsize=None)
def _vmem_capacity_bytes():
    """Physical per-core VMEM (64 MiB v7x, 128 MiB v5e/v6e); conservative fallback."""
    try:
        info = pltpu.get_tpu_info()
        cap = getattr(info, "vmem_capacity_bytes", None)
        if cap:
            return int(cap)
    except Exception:
        pass
    return 64 * 1024 * 1024  # assume the smallest (v7x per-TC) when unknown


@functools.lru_cache(maxsize=None)
def _num_tensorcores():
    """TensorCores per chip (2 on v7x, 1 on v5e/v6e); fallback 1 => never force a split."""
    try:
        info = pltpu.get_tpu_info()
        for name in ("num_cores", "core_count", "num_tensorcores", "tensorcores_per_chip"):
            v = getattr(info, name, None)
            if v:
                return max(1, min(int(v), 2))
    except Exception:
        pass
    try:
        return max(1, min(int(getattr(jax.devices()[0], "num_cores", 1) or 1), 2))
    except Exception:
        return 1


def _maybe_buffered_spec(block_shape, index_map, depth):
    """BlockSpec with pipeline_mode=pl.Buffered(depth) when supported; plain otherwise."""
    if depth is not None and hasattr(pl, "Buffered"):
        try:
            return pl.BlockSpec(block_shape, index_map, pipeline_mode=pl.Buffered(depth))
        except TypeError:  # older BlockSpec signature without pipeline_mode
            pass
    return pl.BlockSpec(block_shape, index_map)


def _pick_tile_m(n, c, itemsize, sublane, vmem_cap, num_cores):
    """Row tile: ~4 MiB per x buffer (8 MiB on 128-MiB parts), lane-padded accounting,
    sublane-aligned, capped by N, split across TensorCores only when there are >=2."""
    c_pad = _round_up(c, 128)                       # VMEM lane padding of the channel axis
    bytes_per_row = c_pad * itemsize
    target_buf = 8 * 1024 * 1024 if vmem_cap >= 96 * 1024 * 1024 else 4 * 1024 * 1024
    ceiling_buf = (vmem_cap * 35 // 100) // 3       # up to triple-buffered x stays <=35% VMEM
    buf_bytes = max(min(target_buf, ceiling_buf), sublane * bytes_per_row)
    tile = max(sublane, (buf_bytes // bytes_per_row) // sublane * sublane)
    n_pad = _round_up(n, sublane)
    tile = min(tile, n_pad)
    if num_cores > 1 and n_pad >= num_cores * sublane:
        tile = min(tile, _round_up(_cdiv(n_pad, num_cores), sublane))
    return max(sublane, tile)


def _vmem_limit_bytes(tile_m, c, itemsize, vmem_cap, x_buffers):
    """Scoped-VMEM request derived from the actual padded buffer bytes (+ headroom)."""
    c_pad = _round_up(c, 128)
    tile_lane = _round_up(tile_m, 128)
    x_bytes = x_buffers * tile_m * c_pad * itemsize          # pipelined x tiles
    out_bytes = 2 * max(8 * tile_lane, tile_m * 128) * itemsize  # out blocks (both layouts)
    w_bytes = 2 * c_pad * 128 * itemsize + 64 * 1024         # resident weights (generous)
    h_bytes = 2 * 8 * tile_lane * 4                          # f32 intermediates
    need = x_bytes + out_bytes + w_bytes + h_bytes
    limit = int(need * 1.25) + 8 * 1024 * 1024               # compiler-scratch headroom
    limit = max(limit, 32 * 1024 * 1024)
    return min(limit, int(vmem_cap * 0.9))


# --------------------------- kernels ---------------------------------------

def _disc_head_kernel_lane_dense(x_ref, w1_ref, b1_ref, w2_ref, b2_ref, o_ref):
    # x_ref:  (TM, C)     input row tile (pipelined from HBM, native dtype to the MXU)
    # w1_ref: (CMAP, C)   first Linear weight, PyTorch layout (resident)
    # b1_ref: (CMAP, 1)
    # w2_ref: (CMAP, 1)   second Linear weight as a column
    # b2_ref: (1, 1)
    # o_ref:  (1, 1, TM)  lane-dense output row for this tile
    #
    # Layer 1 on the MXU, contracting the channel axis of both operands so h is
    # (CMAP, TM): cmap on sublanes, TM on lanes -> all post-matmul work is lane-dense.
    h = jax.lax.dot_general(
        w1_ref[...], x_ref[...],
        dimension_numbers=(((1,), (1,)), ((), ())),   # (CMAP,C) . (TM,C)^T -> (CMAP,TM)
        preferred_element_type=jnp.float32)
    h = h + b1_ref[...].astype(jnp.float32)
    h = jnp.maximum(h, 0.2 * h)                        # LeakyReLU(0.2): one vmul + one vmax
    # Layer 2 (K=cmap, N=1): scale + tiny sublane reduce; not worth an MXU push/pop.
    y = jnp.sum(h * w2_ref[...].astype(jnp.float32), axis=0, keepdims=True)   # (1, TM)
    y = y + b2_ref[...].astype(jnp.float32)
    o_ref[...] = y.astype(o_ref.dtype).reshape(o_ref.shape)


def _disc_head_kernel_wide(x_ref, w1t_ref, b1_ref, w2_ref, b2_ref, o_ref):
    # Wide-channel path (x DMA dominates): natural (TM, cmap) orientation.
    # x_ref: (TM, C); w1t_ref: (C, CMAP); b1_ref/w2_ref: (1, CMAP); b2_ref: (1,1); o_ref: (TM,1)
    h = jnp.dot(x_ref[...], w1t_ref[...], preferred_element_type=jnp.float32)
    h = h + b1_ref[...].astype(jnp.float32)
    h = jnp.maximum(h, 0.2 * h)
    y = jnp.sum(h * w2_ref[...].astype(jnp.float32), axis=-1, keepdims=True)
    y = y + b2_ref[...].astype(jnp.float32)
    o_ref[...] = y.astype(o_ref.dtype)


# --------------------------- wrapper ----------------------------------------

_SMALL_C_MAX = 512   # below this, VALU / masked-store work would dominate the x DMA


@functools.partial(jax.jit, static_argnames=("max_tile_rows",))
def disc_head_forward(x, w1, b1, w2, b2, *, max_tile_rows=None):
    """DiscHead forward.  x: [N, channels]; params in PyTorch nn.Linear layout:
    w1: [cmap, channels], b1: [cmap], w2: [1, cmap], b2: [1].  Returns [N, 1]."""
    n, c = x.shape
    cmap = w1.shape[0]
    itemsize = x.dtype.itemsize
    sublane = 16 if itemsize == 2 else 8

    vmem_cap = _vmem_capacity_bytes()
    num_cores = _num_tensorcores()
    tile_m = _pick_tile_m(n, c, itemsize, sublane, vmem_cap, num_cores)
    if max_tile_rows is not None:   # tuning / test override
        tile_m = max(sublane, min(tile_m, (int(max_tile_rows) // sublane) * sublane))
    grid_m = _cdiv(n, tile_m)
    vmem_limit = _vmem_limit_bytes(tile_m, c, itemsize, vmem_cap, x_buffers=3)

    # MXU operands must share a dtype (avoid a per-tile VPU promotion of the x tile).
    w1 = w1.astype(x.dtype)

    cost = pl.CostEstimate(
        flops=2 * n * c * cmap + 4 * n * cmap,
        transcendentals=0,
        bytes_accessed=n * c * itemsize + cmap * c * itemsize + n * itemsize)

    # Triple-buffer the streaming x tiles (only useful when the grid is deep enough).
    x_spec = _maybe_buffered_spec((tile_m, c), lambda i: (i, 0),
                                  depth=3 if grid_m >= 4 else None)

    compiler_params = pltpu.CompilerParams(
        dimension_semantics=("parallel",),     # independent row tiles (megacore-shardable)
        vmem_limit_bytes=vmem_limit)

    if c <= _SMALL_C_MAX:
        # Lane-dense output layout (grid_m, 1, tile_m); un-padded back to (N, 1) below.
        out = pl.pallas_call(
            _disc_head_kernel_lane_dense,
            out_shape=jax.ShapeDtypeStruct((grid_m, 1, tile_m), x.dtype),
            grid_spec=pltpu.PrefetchScalarGridSpec(
                num_scalar_prefetch=0,
                grid=(grid_m,),
                in_specs=[
                    x_spec,                                          # x row tile (pipelined)
                    pl.BlockSpec((cmap, c), lambda i: (0, 0)),       # W1 (resident)
                    pl.BlockSpec((cmap, 1), lambda i: (0, 0)),       # b1
                    pl.BlockSpec((cmap, 1), lambda i: (0, 0)),       # W2 column
                    pl.BlockSpec((1, 1), lambda i: (0, 0)),          # b2
                ],
                out_specs=pl.BlockSpec((1, 1, tile_m), lambda i: (i, 0, 0)),
            ),
            compiler_params=compiler_params,
            cost_estimate=cost,
        )(x, w1, b1.reshape(cmap, 1), w2.reshape(cmap, 1), b2.reshape(1, 1))
        # Rows beyond N in the overhanging last tile are garbage: slice them off.
        return out.reshape(grid_m * tile_m)[:n].reshape(n, 1)

    # Wide-channel path: HBM-bound on x; keep the natural orientation / (N,1) output.
    return pl.pallas_call(
        _disc_head_kernel_wide,
        out_shape=jax.ShapeDtypeStruct((n, 1), x.dtype),
        grid_spec=pltpu.PrefetchScalarGridSpec(
            num_scalar_prefetch=0,
            grid=(grid_m,),
            in_specs=[
                x_spec,
                pl.BlockSpec((c, cmap), lambda i: (0, 0)),
                pl.BlockSpec((1, cmap), lambda i: (0, 0)),
                pl.BlockSpec((1, cmap), lambda i: (0, 0)),
                pl.BlockSpec((1, 1), lambda i: (0, 0)),
            ],
            out_specs=pl.BlockSpec((tile_m, 1), lambda i: (i, 0)),
        ),
        compiler_params=compiler_params,
        cost_estimate=cost,
    )(x, w1.T, b1.reshape(1, cmap), w2, b2.reshape(1, 1))


# --------------------------- reference / init -------------------------------

def init_disc_head_params(key, channels, cmap_dim=3, dtype=jnp.float32):
    """PyTorch nn.Linear-style init, PyTorch layouts: w1 [cmap,C], b1 [cmap], w2 [1,cmap], b2 [1]."""
    k1, k2, k3, k4 = jax.random.split(key, 4)
    bound1 = channels ** -0.5
    bound2 = cmap_dim ** -0.5
    w1 = jax.random.uniform(k1, (cmap_dim, channels), dtype, -bound1, bound1)
    b1 = jax.random.uniform(k2, (cmap_dim,), dtype, -bound1, bound1)
    w2 = jax.random.uniform(k3, (1, cmap_dim), dtype, -bound2, bound2)
    b2 = jax.random.uniform(k4, (1,), dtype, -bound2, bound2)
    return w1, b1, w2, b2


def reference_forward(x, w1, b1, w2, b2):
    h = x @ w1.T + b1
    h = jnp.where(h >= 0, h, 0.2 * h)
    return h @ w2.T + b2


if __name__ == "__main__":
    key = jax.random.PRNGKey(0)
    k_x, k_p, k_x2 = jax.random.split(key, 3)

    batch, seq, channels, c_dim, cmap_dim = 2, 8, 32, 16, 3
    # c_dim is stored by the PyTorch module but unused in forward(); no kernel effect.

    # DiscHead is applied per-token on feature vectors; flatten leading dims.
    x = jax.random.normal(k_x, (batch, seq, channels), dtype=jnp.float32)
    x2d = x.reshape(-1, channels)                      # [N, channels]

    w1, b1, w2, b2 = init_disc_head_params(k_p, channels, cmap_dim)

    out = jax.block_until_ready(disc_head_forward(x2d, w1, b1, w2, b2))
    ref = reference_forward(x2d, w1, b1, w2, b2)
    assert out.shape == (batch * seq, 1)
    assert jnp.allclose(out, ref, atol=1e-5, rtol=1e-5), "mismatch vs reference"

    # Row count not divisible by the tile -> exercises the overhanging final x block.
    x_odd = jax.random.normal(k_x2, (100, channels), dtype=jnp.float32)
    out_odd = jax.block_until_ready(disc_head_forward(x_odd, w1, b1, w2, b2))
    ref_odd = reference_forward(x_odd, w1, b1, w2, b2)
    assert out_odd.shape == (100, 1)
    assert jnp.allclose(out_odd, ref_odd, atol=1e-5, rtol=1e-5), "partial-block mismatch"

    # Force a multi-tile grid (64-row tiles -> 2 blocks) to exercise the lane-dense
    # (grid_m, 1, tile_m) output layout and the wrapper-side un-padding.
    out_multi = jax.block_until_ready(
        disc_head_forward(x_odd, w1, b1, w2, b2, max_tile_rows=64))
    assert out_multi.shape == (100, 1)
    assert jnp.allclose(out_multi, ref_odd, atol=1e-5, rtol=1e-5), "multi-tile mismatch"

    # Reshape back to [batch, seq, 1] like the PyTorch module would return.
    _ = out.reshape(batch, seq, 1)

    print("KERNEL_OK")
</pallas_src>

<mosaic_0001>
module attributes {stable_mosaic.version = 11 : i64} {
  func.func @_disc_head_kernel_lane_dense(%arg0: i32, %arg1: memref<16x32xf32, #tpu.memory_space<vmem>>, %arg2: memref<3x32xf32, #tpu.memory_space<vmem>>, %arg3: memref<3x1xf32, #tpu.memory_space<vmem>>, %arg4: memref<3x1xf32, #tpu.memory_space<vmem>>, %arg5: memref<1x1xf32, #tpu.memory_space<vmem>>, %arg6: memref<1x1x16xf32, #tpu.memory_space<vmem>>) attributes {dimension_semantics = [#tpu.dimension_semantics<parallel>], iteration_bounds = array<i64: 1>, scalar_prefetch = 0 : i64, scratch_operands = 0 : i64, tpu.core_type = #tpu.core_type<tc>, window_params = [{transform_indices = @transform_0, window_bounds = array<i64: 16, 32>}, {pipeline_mode = #tpu.pipeline_mode<synchronous>, transform_indices = @transform_1, window_bounds = array<i64: 3, 32>}, {pipeline_mode = #tpu.pipeline_mode<synchronous>, transform_indices = @transform_2, window_bounds = array<i64: 3, 1>}, {pipeline_mode = #tpu.pipeline_mode<synchronous>, transform_indices = @transform_3, window_bounds = array<i64: 3, 1>}, {pipeline_mode = #tpu.pipeline_mode<synchronous>, transform_indices = @transform_4, window_bounds = array<i64: 1, 1>}, {transform_indices = @transform_5, window_bounds = array<i64: 1, 1, 16>}]} {
    %c0 = arith.constant 0 : index
    %c0_0 = arith.constant 0 : index
    %0 = vector.load %arg2[%c0, %c0_0] : memref<3x32xf32, #tpu.memory_space<vmem>>, vector<3x32xf32>
    %c0_1 = arith.constant 0 : index
    %c0_2 = arith.constant 0 : index
    %1 = vector.load %arg1[%c0_1, %c0_2] : memref<16x32xf32, #tpu.memory_space<vmem>>, vector<16x32xf32>
    %cst = arith.constant dense<0.000000e+00> : vector<3x16xf32>
    %2 = tpu.matmul %0, %1, %cst {dimension_numbers = #tpu.dot_dimension_numbers<[1], [1], [0], [0], [0, 0, 1, 0], [], []>} : vector<3x32xf32>, vector<16x32xf32>, vector<3x16xf32> -> vector<3x16xf32>
    %c0_3 = arith.constant 0 : index
    %c0_4 = arith.constant 0 : index
    %3 = vector.load %arg3[%c0_3, %c0_4] : memref<3x1xf32, #tpu.memory_space<vmem>>, vector<3x1xf32>
    %4 = vector.broadcast %3 : vector<3x1xf32> to vector<3x16xf32>
    %5 = arith.addf %2, %4 : vector<3x16xf32>
    %cst_5 = arith.constant 2.000000e-01 : f32
    %6 = vector.broadcast %cst_5 : f32 to vector<3x16xf32>
    %7 = arith.mulf %6, %5 : vector<3x16xf32>
    %8 = arith.maximumf %5, %7 : vector<3x16xf32>
    %c0_6 = arith.constant 0 : index
    %c0_7 = arith.constant 0 : index
    %9 = vector.load %arg4[%c0_6, %c0_7] : memref<3x1xf32, #tpu.memory_space<vmem>>, vector<3x1xf32>
    %10 = vector.broadcast %9 : vector<3x1xf32> to vector<3x16xf32>
    %11 = arith.mulf %8, %10 : vector<3x16xf32>
    %cst_8 = arith.constant dense<0.000000e+00> : vector<16xf32>
    %12 = vector.multi_reduction <add>, %11, %cst_8 [0] : vector<3x16xf32> to vector<16xf32>
    %13 = vector.shape_cast %12 : vector<16xf32> to vector<1x16xf32>
    %c0_9 = arith.constant 0 : index
    %c0_10 = arith.constant 0 : index
    %14 = vector.load %arg5[%c0_9, %c0_10] : memref<1x1xf32, #tpu.memory_space<vmem>>, vector<1x1xf32>
    %15 = vector.broadcast %14 : vector<1x1xf32> to vector<1x16xf32>
    %16 = arith.addf %13, %15 : vector<1x16xf32>
    %17 = vector.shape_cast %16 : vector<1x16xf32> to vector<1x1x16xf32>
    %c0_11 = arith.constant 0 : index
    %c0_12 = arith.constant 0 : index
    %c0_13 = arith.constant 0 : index
    %18 = vector.load %arg6[%c0_11, %c0_12, %c0_13] : memref<1x1x16xf32, #tpu.memory_space<vmem>>, vector<1x1x16xf32>
    tpu.vector_store %arg6[%c0_11, %c0_12, %c0_13], %17 {strides = array<i32>} : memref<1x1x16xf32, #tpu.memory_space<vmem>>, vector<1x1x16xf32>,
    return
  }
  func.func @transform_0(%arg0: i32) -> (i32, i32) {
    %c0_i32 = arith.constant 0 : i32
    %c0_i32_0 = arith.constant 0 : i32
    return %arg0, %c0_i32 : i32, i32
  }
  func.func @transform_1(%arg0: i32) -> (i32, i32) {
    %c0_i32 = arith.constant 0 : i32
    %c0_i32_0 = arith.constant 0 : i32
    %c0_i32_1 = arith.constant 0 : i32
    return %c0_i32, %c0_i32_0 : i32, i32
  }
  func.func @transform_2(%arg0: i32) -> (i32, i32) {
    %c0_i32 = arith.constant 0 : i32
    %c0_i32_0 = arith.constant 0 : i32
    %c0_i32_1 = arith.constant 0 : i32
    return %c0_i32, %c0_i32_0 : i32, i32
  }
  func.func @transform_3(%arg0: i32) -> (i32, i32) {
    %c0_i32 = arith.constant 0 : i32
    %c0_i32_0 = arith.constant 0 : i32
    %c0_i32_1 = arith.constant 0 : i32
    return %c0_i32, %c0_i32_0 : i32, i32
  }
  func.func @transform_4(%arg0: i32) -> (i32, i32) {
    %c0_i32 = arith.constant 0 : i32
    %c0_i32_0 = arith.constant 0 : i32
    %c0_i32_1 = arith.constant 0 : i32
    return %c0_i32, %c0_i32_0 : i32, i32
  }
  func.func @transform_5(%arg0: i32) -> (i32, i32, i32) {
    %c0_i32 = arith.constant 0 : i32
    %c0_i32_0 = arith.constant 0 : i32
    %c0_i32_1 = arith.constant 0 : i32
    return %arg0, %c0_i32, %c0_i32_0 : i32, i32, i32
  }
}

</mosaic_0001>

<bundles_post_ra>
// kernel: disc_head_forward.1
= control target key start
LH: loop header
LB: loop body
LE: loop exit
PB: predicated region body
PF: predicated region fallthrough
CT: control target
= control target key end

     0   :  { %s272_s0 = inlined_call_operand.vmem [shape: f32[16,32], index: 0, kind: input, shape index: {}]   ;;  %s273_s1 = inlined_call_operand.vmem [shape: f32[3,32], index: 1, kind: input, shape index: {}]   ;;  %s274_s2 = inlined_call_operand.vmem [shape: f32[3,1], index: 2, kind: input, shape index: {}]   ;;  %s275_s3 = inlined_call_operand.vmem [shape: f32[3,1], index: 3, kind: input, shape index: {}]   ;;  %s276_s4 = inlined_call_operand.<no memory space> [shape: f32[1,1], index: 4, kind: input, shape index: {}]   ;;  %s277_s5 = inlined_call_operand.hbm [shape: f32[1,1,16], index: 5, kind: output, shape index: {}]  }
   0x1   :  { %v10_v0 = vstv %s276_s4 }
   0x2   :  { %11 = vst [vmem:[#allocation2] sm:$0x1] %v10_v0 }
   0x3   :  { %v24_v1 = vld [vmem:[%s272_s0] sm:$0xff]  ;;  %v25_v2 = vld [vmem:[%s272_s0 + $0x8] sm:$0xff]  ;;  %vm32_vm0 = vcmask 261120   ;;  %v204_v3 = vmov 0.0|0.0   ;;  %vm205_vm2 = vmmov 0   ;;  %v206_v5 = vmov 0.0  }
   0x4   :  { %169 = vmatprep.subr.bf16.mxu0 %v204_v3  ;;  %v170_v4 = vpack.c.bf16 %v25_v2, %v24_v1  ;;  %vm171_vm1 = vmpackc.low %vm32_vm0, %vm32_vm0  ;;  %166 = vmatprep.mubr.msk.f32.mxu0 %vm205_vm2, %v206_v5  ;;  %v26_v6 = vld [vmem:[%s274_s2] sm:$0x7]  ;;  %v207_v7 = vmov 0  }
   0x5   :  { %178 = vset.pattern.permute.xlu0 %v207_v7  ;;  %179 = vset.pattern.permute.xlu1 %v207_v7 }
   0x9   :  { %v129_v8 = vld [vmem:[#allocation2] sm:$0x1] }
   0xa   :  { %12 = vsyncpa [#allocation4], 0  ;;  %172 = vmatpush3.bf16.xpose.msk.msra.mxu0 %vm171_vm1, %v170_v4  ;;  %29 = vperm.xlu0 %178, %v26_v6   ;;  %v114_v9 = vld [vmem:[%s275_s3] sm:$0x7]  ;;  %vm121_vm3 = vcmask 124928   ;;  %v135_v18 = vlaneseq  ;;  %vm140_vm4 = vcmask 122880  }
   0xb   :  { %132 = vperm.xlu1 %179, %v129_v8   ;;  %v23_v10 = vld [vmem:[%s273_s1] sm:$0x7]  ;;  %s208_s1 = smov [#allocation3]  }
   0xc   :  { %v136_v22 = vshrl.u32 %v135_v18, 7  ;;  %s148_s2 = sshll.u32 %s208_s1, 4  ;;  %s149_s2 = int_to_ptr.vmem [resolvable:$true] %s148_s2 }
   0xd   :  { %s180_s3 = scalar_lea.vmem %s149_s2, 16  ;;  %s184_s28 = scalar_lea.vmem %s149_s2, 32 }
   0xe   :  { %117 = vperm.xlu0 %178, %v114_v9   ;;  %v137_v24 = vsub.s32 0, %v136_v22  ;;  %p181_p0 = scmp.ne.s32.totalorder %s149_s2, %s180_s3  ;;  %p185_p1 = scmp.lt.s32.totalorder %s149_s2, %s149_s2 }
   0xf   :  { %p186_p2 = scmp.lt.s32.totalorder %s184_s28, %s180_s3 }
  0x11   :  { %167 = vmatmul.mubr.msk.f32.vlgmr.msra.gmra.mrb[0].mxu0 %vm32_vm0, %v23_v10  ;;  %p187_p3 = por %p186_p2, %p185_p1 }
  0x13   :  { %p188_p4 = pnand %p187_p3, %p181_p0 }
  0x89   :  { %v30_v11 = vpop.permute.xlu0 %29 }
  0x8a   :  { %v133_v26 = vpop.permute.xlu1 %132 }
  0x8b   :  { %v138_v29 = vrot.slane %v133_v26, %v137_v24 }
  0x8d   :  { %v118_v17 = vpop.permute.xlu0 %117 }
  0xe4   :  { %v108_v12 = vpop.f32.mrb[0].mxu0 }
  0xe5   :  { %v109_v13 = vadd.f32 %v108_v12, %v30_v11  ;;  %v168_v14 = vpop.f32.mrb[1].mxu0 }
  0xe7   :  { %v112_v15 = vmul.f32 0.2, %v109_v13 }
  0xe9   :  { %v113_v16 = vmax.f32 %v109_v13, %v112_v15 }
  0xeb   :  { %v120_v19 = vmul.f32 %v118_v17, %v113_v16 }
  0xed   :  { %v122_v20 = vsel %vm121_vm3, %v120_v19, 0.0 }
  0xee   :  { %v123_v21 = vrot.slane %v122_v20, 4 }
  0xf0   :  { %v124_v23 = vadd.f32 %v123_v21, %v122_v20 }
  0xf2   :  { %v125_v25 = vrot.slane %v124_v23, 2 }
  0xf4   :  { %v126_v27 = vadd.f32 %v125_v25, %v124_v23 }
  0xf6   :  { %v127_v28 = vrot.slane %v126_v27, 1 }
  0xf8   :  { %v128_v30 = vadd.f32 %v127_v28, %v126_v27 }
  0xfa   :  { %v139_v31 = vadd.f32 %v138_v29, %v128_v30 }
  0xfc   :  { %141 = vst.msk [vmem:[#allocation3] sm:$0x1] %vm140_vm4, %v139_v31 }
  0xfd   :  { %191 = shalt.err (!%p188_p4)
}
  0xfe   :  { %s192_s6 = scalar_lea.hbm %s277_s5, 16 }
  0xff   :  { %p193_p5 = scmp.ne.s32.totalorder %s277_s5, %s192_s6  ;;  %p196_p6 = scmp.lt.u32.totalorder %s192_s6, %s277_s5 }
 0x101   :  { %p198_p7 = pnand %p196_p6, %p193_p5 }
 0x103   :  { %201 = shalt.err (!%p198_p7)
}
 0x104   :  { %151 = dma.vmem_to_hbm [thread:$0]  %s149_s2, 16, %s277_s5, [#allocation4]  }
 0x105   :  { %202 = dma.done.wait [#allocation4], 16  }
 0x106   :  { %203 = vsyncadd [#allocation4], 4294967280 }
 0x107   :  { %155 = vsyncpa [#allocation4], 1 }

</bundles_post_ra>
